<compile_context>
chip_gen: v6e
topology: v6e:2x2x1
jax: 0.10.0
libtpu: 0.0.40
codegen_flags: <defaults>
</compile_context>

<pallas_src>
import functools

import jax
import jax.numpy as jnp
from jax import lax
from jax.experimental import pallas as pl
from jax.experimental.pallas import tpu as pltpu

EPS = 1e-5        # InstanceNorm2d default eps
NEG_SLOPE = 0.2   # LeakyReLU slope


# --------------------------------- kernel ----------------------------------
def residual_block_kernel(x_ref, w1_ref, w2_ref, wr_ref, br_ref, out_ref, *,
                          NB, H, W, Cout):
    """NB images per grid step, lane-dense flat (NB*H, W*C) layout throughout.

    x_ref  : (NB*H, W*Cin)       flattened NHWC rows (batch folded into M)
    w1_ref : (3, W*Cin, W*Cout)  conv1: kw taps + channel mix folded per kh
    w2_ref : (3, W*Cout, W*Cout) conv2: same folding
    wr_ref : (W*Cin, W*Cout)     residual 1x1 conv, block-diagonal folding
    br_ref : (1, W*Cout)         residual bias, tiled per lane
    out_ref: (NB*H, W*Cout)      lane-dense output (128 lanes at the demo shape)
    """
    f32 = jnp.float32
    NBH = NB * H
    L = W * Cout
    inv_hw = f32(1.0 / (H * W))
    mxu_dtype = w1_ref.dtype          # f32, or bf16 when use_bf16=True

    x = x_ref[...]                    # (NBH, W*Cin), matmul-operand dtype

    # Per-image row-boundary masks (tiny (NBH,1) iota; the big per-step
    # constant construction of the old version is gone entirely).
    row_in_img = lax.broadcasted_iota(jnp.int32, (NBH, 1), 0) % H
    first_row = row_in_img == 0            # top row of each image
    last_row = row_in_img == (H - 1)       # bottom row of each image

    def conv3x3(v, w_ref):
        # v: (NBH, Lin); w_ref: (3, Lin, Lout) -> (NBH, Lout) f32.
        # Zero padding along W is baked into the folded weights; along H it
        # comes from masking the roll-wrapped boundary row of each image.
        acc = jnp.dot(v, w_ref[1], preferred_element_type=f32)            # kh=1
        # kh=2 uses x[i+1]: XLU sublane roll (overlaps the MXU dot above).
        v_up = jnp.where(last_row, 0.0, pltpu.roll(v, NBH - 1, axis=0))
        acc = acc + jnp.dot(v_up, w_ref[2], preferred_element_type=f32)   # kh=2
        # kh=0 uses x[i-1].
        v_dn = jnp.where(first_row, 0.0, pltpu.roll(v, 1, axis=0))
        acc = acc + jnp.dot(v_dn, w_ref[0], preferred_element_type=f32)   # kh=0
        return acc

    def lane_channel_allsum(s):
        # s: (NB, L).  log2(W) roll-and-add tree along lanes: shifting by
        # multiples of Cout stays within a channel (lane = w*Cout + c), so each
        # lane ends up holding the per-channel sum over all W positions,
        # already broadcast to every lane.  Requires W to be a power of two.
        k = 1
        while k < W:
            s = s + pltpu.roll(s, k * Cout, axis=1)
            k *= 2
        return s

    def inorm_lrelu(z):
        # InstanceNorm (per image & channel, over H*W, biased var) + LeakyReLU,
        # with the reductions done as: sublane-sum over H first, then the lane
        # roll-tree over W -- no MXU work, no (L,L) avg matrix.
        z3 = z.reshape(NB, H, L)                                   # f32
        mean = lane_channel_allsum(jnp.sum(z3, axis=1)) * inv_hw   # (NB, L)
        d = z3 - mean[:, None, :]
        var = lane_channel_allsum(jnp.sum(d * d, axis=1)) * inv_hw # (NB, L)
        zn = d * lax.rsqrt(var[:, None, :] + EPS)
        zn = zn.reshape(NBH, L)
        return jnp.maximum(zn, NEG_SLOPE * zn)                     # LeakyReLU(0.2)

    # Conv biases before InstanceNorm are dropped (exact no-op: the mean
    # subtraction cancels any constant per-channel shift).
    y = inorm_lrelu(conv3x3(x, w1_ref))
    y = inorm_lrelu(conv3x3(y.astype(mxu_dtype), w2_ref))

    # Residual branch: 1x1 conv (block-diagonal in the flat layout;
    # identity weights when Cin == Cout).
    res = jnp.dot(x, wr_ref[...], preferred_element_type=f32) + br_ref[...].astype(f32)

    out_ref[...] = (res + y).astype(out_ref.dtype)   # lane-dense (NBH, W*Cout) store


# ------------------------- host-side weight folding ------------------------
def _expand_conv3x3_weights(w, W):
    """(3, 3, Cin, Cout) HWIO -> (3, W*Cin, W*Cout).

    For each row-tap kh, fold the three kw taps and the channel mixing into one
    dense matrix acting on a flattened (W*Cin,) image row; zero padding along W
    is encoded by the validity mask.  Tiny op on the raw weights only.
    """
    _, _, Cin, Cout = w.shape
    j_in = jnp.arange(W)[:, None]
    j_out = jnp.arange(W)[None, :]
    kw = j_in - j_out + 1                                  # (W, W)
    valid = (kw >= 0) & (kw <= 2)
    big = w[:, jnp.clip(kw, 0, 2), :, :]                   # (3, W, W, Cin, Cout)
    big = jnp.where(valid[None, :, :, None, None], big, 0.0)
    big = jnp.transpose(big, (0, 1, 3, 2, 4))              # (3, j_in, Cin, j_out, Cout)
    return big.reshape(3, W * Cin, W * Cout)


def _expand_1x1_weights(wr, W):
    """(Cin, Cout) -> block-diagonal (W*Cin, W*Cout) acting on flattened rows."""
    Cin, Cout = wr.shape
    eye_w = jnp.eye(W, dtype=wr.dtype)
    big = eye_w[:, None, :, None] * wr[None, :, None, :]   # (W, Cin, W, Cout)
    return big.reshape(W * Cin, W * Cout)


# --------------------------------- wrapper ---------------------------------
def residual_block_nhwc(x_nhwc, w1, w2, wr, br, *, images_per_step=None,
                        use_bf16=False):
    """x_nhwc: (N, H, W, Cin). Returns NHWC (N, H, W, Cout)."""
    N, H, W, Cin = x_nhwc.shape
    Cout = w1.shape[-1]
    assert W & (W - 1) == 0, "lane roll-tree IN reduction needs power-of-two W"
    # TODO(synk): non-power-of-two W would need the dense avg-matrix fallback.

    if images_per_step is None:
        # Fold the whole batch into the matmul M dim (best on single-TC
        # v5e/v6e); on v7x pass images_per_step = N // 2 so both TCs get work.
        images_per_step = N
    NB = images_per_step
    assert N % NB == 0

    # NHWC is contiguous as (N*H, W*C): this reshape is free and there is no
    # zero-padding round trip through HBM (padding is handled in-kernel).
    x_flat = x_nhwc.reshape(N * H, W * Cin)
    w1b = _expand_conv3x3_weights(w1, W)
    w2b = _expand_conv3x3_weights(w2, W)
    wrb = _expand_1x1_weights(wr, W)
    brf = jnp.tile(br.reshape(1, Cout), (1, W))            # (1, W*Cout), stays f32

    if use_bf16:
        # bf16 MXU operands (v5e/v6e/v7x are bf16-native; f32 is multi-pass).
        # Caveat: relax the correctness tolerance to ~1e-2 when enabling.
        x_flat = x_flat.astype(jnp.bfloat16)
        w1b = w1b.astype(jnp.bfloat16)
        w2b = w2b.astype(jnp.bfloat16)
        wrb = wrb.astype(jnp.bfloat16)

    kernel = functools.partial(residual_block_kernel, NB=NB, H=H, W=W, Cout=Cout)
    out_flat = pl.pallas_call(
        kernel,
        out_shape=jax.ShapeDtypeStruct((N * H, W * Cout), x_nhwc.dtype),
        grid_spec=pltpu.PrefetchScalarGridSpec(
            num_scalar_prefetch=0,
            grid=(N // NB,),
            in_specs=[
                pl.BlockSpec((NB * H, W * Cin), lambda b: (b, 0)),
                pl.BlockSpec((3, W * Cin, W * Cout), lambda b: (0, 0, 0)),
                pl.BlockSpec((3, W * Cout, W * Cout), lambda b: (0, 0, 0)),
                pl.BlockSpec((W * Cin, W * Cout), lambda b: (0, 0)),
                pl.BlockSpec((1, W * Cout), lambda b: (0, 0)),
            ],
            out_specs=pl.BlockSpec((NB * H, W * Cout), lambda b: (b, 0)),
        ),
        compiler_params=pltpu.CompilerParams(
            dimension_semantics=("parallel",)),
    )(x_flat, w1b, w2b, wrb, brf)

    return out_flat.reshape(N, H, W, Cout)


@jax.jit
def residual_block_nchw(x_nchw, w1, w2, wr, br):
    """PyTorch-style NCHW interface.  (Producers that already emit NHWC can
    call residual_block_nhwc directly and skip both transposes.)"""
    x_nhwc = jnp.transpose(x_nchw, (0, 2, 3, 1))
    y = residual_block_nhwc(x_nhwc, w1, w2, wr, br)
    return jnp.transpose(y, (0, 3, 1, 2))


# ------------------------- pure-JAX reference ------------------------------
def _ref_residual_block(x_nchw, w1, b1, w2, b2, wr, br):
    def conv(x, w_hwio, b):
        w_oihw = jnp.transpose(w_hwio, (3, 2, 0, 1))
        kh = w_hwio.shape[0]
        pad = (kh - 1) // 2
        y = jax.lax.conv_general_dilated(
            x, w_oihw, window_strides=(1, 1),
            padding=((pad, pad), (pad, pad)),
            dimension_numbers=("NCHW", "OIHW", "NCHW"))
        return y + b.reshape(1, -1, 1, 1)

    def inorm(x):
        mean = jnp.mean(x, axis=(2, 3), keepdims=True)
        var = jnp.mean((x - mean) ** 2, axis=(2, 3), keepdims=True)
        return (x - mean) * jax.lax.rsqrt(var + EPS)

    def lrelu(x):
        return jnp.where(x > 0, x, NEG_SLOPE * x)

    h = lrelu(inorm(conv(x_nchw, w1, b1)))
    h = lrelu(inorm(conv(h, w2, b2)))
    res = conv(x_nchw, wr.reshape(1, 1, *wr.shape), br)
    return res + h


# --------------------------------- main ------------------------------------
if __name__ == "__main__":
    key = jax.random.PRNGKey(0)
    N, Cin, Cout, H, W = 2, 4, 8, 16, 16

    k = jax.random.split(key, 8)
    x = jax.random.normal(k[0], (N, Cin, H, W), jnp.float32)

    # Deterministic synthetic parameters (shapes as in the nn.Conv2d layers).
    w1 = 0.1 * jax.random.normal(k[1], (3, 3, Cin, Cout), jnp.float32)   # conv1 (HWIO)
    b1 = 0.05 * jax.random.normal(k[2], (Cout,), jnp.float32)            # ref only (no-op pre-IN)
    w2 = 0.1 * jax.random.normal(k[3], (3, 3, Cout, Cout), jnp.float32)  # conv2 (HWIO)
    b2 = 0.05 * jax.random.normal(k[4], (Cout,), jnp.float32)            # ref only (no-op pre-IN)
    if Cin != Cout:
        wr = 0.1 * jax.random.normal(k[5], (Cin, Cout), jnp.float32)     # 1x1 residual conv
        br = 0.05 * jax.random.normal(k[6], (Cout,), jnp.float32)
    else:
        wr = jnp.eye(Cin, dtype=jnp.float32)                             # Identity residual
        br = jnp.zeros((Cout,), jnp.float32)

    out = residual_block_nchw(x, w1, w2, wr, br)
    out = jax.block_until_ready(out)

    ref = _ref_residual_block(x, w1, b1, w2, b2, wr, br)
    assert out.shape == (N, Cout, H, W)
    err = float(jnp.max(jnp.abs(out - ref)))
    assert jnp.allclose(out, ref, atol=1e-4, rtol=1e-4), err

    print("KERNEL_OK")
</pallas_src>

<mosaic_0001>
module attributes {stable_mosaic.version = 11 : i64} {
  func.func @residual_block_kernel(%arg0: i32, %arg1: memref<32x64xf32, #tpu.memory_space<vmem>>, %arg2: memref<3x64x128xf32, #tpu.memory_space<vmem>>, %arg3: memref<3x128x128xf32, #tpu.memory_space<vmem>>, %arg4: memref<64x128xf32, #tpu.memory_space<vmem>>, %arg5: memref<1x128xf32, #tpu.memory_space<vmem>>, %arg6: memref<32x128xf32, #tpu.memory_space<vmem>>) attributes {dimension_semantics = [#tpu.dimension_semantics<parallel>], iteration_bounds = array<i64: 1>, scalar_prefetch = 0 : i64, scratch_operands = 0 : i64, tpu.core_type = #tpu.core_type<tc>, window_params = [{transform_indices = @transform_0, window_bounds = array<i64: 32, 64>}, {pipeline_mode = #tpu.pipeline_mode<synchronous>, transform_indices = @transform_1, window_bounds = array<i64: 3, 64, 128>}, {pipeline_mode = #tpu.pipeline_mode<synchronous>, transform_indices = @transform_2, window_bounds = array<i64: 3, 128, 128>}, {pipeline_mode = #tpu.pipeline_mode<synchronous>, transform_indices = @transform_3, window_bounds = array<i64: 64, 128>}, {pipeline_mode = #tpu.pipeline_mode<synchronous>, transform_indices = @transform_4, window_bounds = array<i64: 1, 128>}, {transform_indices = @transform_5, window_bounds = array<i64: 32, 128>}]} {
    %c0 = arith.constant 0 : index
    %c0_0 = arith.constant 0 : index
    %0 = vector.load %arg1[%c0, %c0_0] : memref<32x64xf32, #tpu.memory_space<vmem>>, vector<32x64xf32>
    %1 = tpu.iota {dimensions = array<i32: 0>} : vector<32x1xi32>
    %c16_i32 = arith.constant 16 : i32
    %c0_i32 = arith.constant 0 : i32
    %2 = arith.cmpi eq, %c16_i32, %c0_i32 : i32
    %c1_i32 = arith.constant 1 : i32
    %3 = arith.select %2, %c1_i32, %c16_i32 : i32
    %4 = vector.broadcast %3 : i32 to vector<32x1xi32>
    %5 = arith.remsi %1, %4 : vector<32x1xi32>
    %c0_i32_1 = arith.constant 0 : i32
    %6 = vector.broadcast %c0_i32_1 : i32 to vector<32x1xi32>
    %7 = arith.cmpi ne, %5, %6 : vector<32x1xi32>
    %c0_i32_2 = arith.constant 0 : i32
    %8 = vector.broadcast %c0_i32_2 : i32 to vector<32x1xi32>
    %9 = arith.cmpi slt, %5, %8 : vector<32x1xi32>
    %c0_i32_3 = arith.constant 0 : i32
    %10 = arith.cmpi slt, %3, %c0_i32_3 : i32
    %11 = vector.broadcast %10 : i1 to vector<32x1xi1>
    %12 = vector.broadcast %11 : vector<32x1xi1> to vector<32x1xi1>
    %13 = arith.xori %9, %12 : vector<32x1xi1>
    %14 = arith.andi %13, %7 : vector<32x1xi1>
    %15 = vector.broadcast %3 : i32 to vector<32x1xi32>
    %16 = arith.addi %5, %15 : vector<32x1xi32>
    %17 = arith.select %14, %16, %5 : vector<32x1xi1>, vector<32x1xi32>
    %c0_i32_4 = arith.constant 0 : i32
    %18 = vector.broadcast %c0_i32_4 : i32 to vector<32x1xi32>
    %19 = arith.cmpi eq, %17, %18 : vector<32x1xi32>
    %c15_i32 = arith.constant 15 : i32
    %20 = vector.broadcast %c15_i32 : i32 to vector<32x1xi32>
    %21 = arith.cmpi eq, %17, %20 : vector<32x1xi32>
    %c1 = arith.constant 1 : index
    %c0_5 = arith.constant 0 : index
    %c0_6 = arith.constant 0 : index
    %22 = vector.load %arg2[%c1, %c0_5, %c0_6] : memref<3x64x128xf32, #tpu.memory_space<vmem>>, vector<1x64x128xf32>
    %23 = vector.shape_cast %22 : vector<1x64x128xf32> to vector<64x128xf32>
    %cst = arith.constant dense<0.000000e+00> : vector<32x128xf32>
    %24 = tpu.matmul %0, %23, %cst {dimension_numbers = #tpu.dot_dimension_numbers<[1], [0], [0], [1], [0, 0, 1, 1], [], []>} : vector<32x64xf32>, vector<64x128xf32>, vector<32x128xf32> -> vector<32x128xf32>
    %c31_i32 = arith.constant 31 : i32
    %25 = tpu.dynamic_rotate %0 by %c31_i32 dim 0 : vector<32x64xf32>, i32 -> vector<32x64xf32>
    %cst_7 = arith.constant 0.000000e+00 : f32
    %26 = vector.shape_cast %21 : vector<32x1xi1> to vector<32x1xi1>
    %27 = vector.broadcast %26 : vector<32x1xi1> to vector<32x64xi1>
    %28 = vector.broadcast %cst_7 : f32 to vector<32x64xf32>
    %29 = arith.select %27, %28, %25 : vector<32x64xi1>, vector<32x64xf32>
    %c2 = arith.constant 2 : index
    %c0_8 = arith.constant 0 : index
    %c0_9 = arith.constant 0 : index
    %30 = vector.load %arg2[%c2, %c0_8, %c0_9] : memref<3x64x128xf32, #tpu.memory_space<vmem>>, vector<1x64x128xf32>
    %31 = vector.shape_cast %30 : vector<1x64x128xf32> to vector<64x128xf32>
    %cst_10 = arith.constant dense<0.000000e+00> : vector<32x128xf32>
    %32 = tpu.matmul %29, %31, %cst_10 {dimension_numbers = #tpu.dot_dimension_numbers<[1], [0], [0], [1], [0, 0, 1, 1], [], []>} : vector<32x64xf32>, vector<64x128xf32>, vector<32x128xf32> -> vector<32x128xf32>
    %33 = arith.addf %24, %32 : vector<32x128xf32>
    %c1_i32_11 = arith.constant 1 : i32
    %34 = tpu.dynamic_rotate %0 by %c1_i32_11 dim 0 : vector<32x64xf32>, i32 -> vector<32x64xf32>
    %cst_12 = arith.constant 0.000000e+00 : f32
    %35 = vector.shape_cast %19 : vector<32x1xi1> to vector<32x1xi1>
    %36 = vector.broadcast %35 : vector<32x1xi1> to vector<32x64xi1>
    %37 = vector.broadcast %cst_12 : f32 to vector<32x64xf32>
    %38 = arith.select %36, %37, %34 : vector<32x64xi1>, vector<32x64xf32>
    %c0_13 = arith.constant 0 : index
    %c0_14 = arith.constant 0 : index
    %c0_15 = arith.constant 0 : index
    %39 = vector.load %arg2[%c0_13, %c0_14, %c0_15] : memref<3x64x128xf32, #tpu.memory_space<vmem>>, vector<1x64x128xf32>
    %40 = vector.shape_cast %39 : vector<1x64x128xf32> to vector<64x128xf32>
    %cst_16 = arith.constant dense<0.000000e+00> : vector<32x128xf32>
    %41 = tpu.matmul %38, %40, %cst_16 {dimension_numbers = #tpu.dot_dimension_numbers<[1], [0], [0], [1], [0, 0, 1, 1], [], []>} : vector<32x64xf32>, vector<64x128xf32>, vector<32x128xf32> -> vector<32x128xf32>
    %42 = arith.addf %33, %41 : vector<32x128xf32>
    %43 = vector.shape_cast %42 : vector<32x128xf32> to vector<2x16x128xf32>
    %cst_17 = arith.constant dense<0.000000e+00> : vector<2x128xf32>
    %44 = vector.multi_reduction <add>, %43, %cst_17 [1] : vector<2x16x128xf32> to vector<2x128xf32>
    %c8_i32 = arith.constant 8 : i32
    %45 = tpu.dynamic_rotate %44 by %c8_i32 dim 1 : vector<2x128xf32>, i32 -> vector<2x128xf32>
    %46 = arith.addf %44, %45 : vector<2x128xf32>
    %c16_i32_18 = arith.constant 16 : i32
    %47 = tpu.dynamic_rotate %46 by %c16_i32_18 dim 1 : vector<2x128xf32>, i32 -> vector<2x128xf32>
    %48 = arith.addf %46, %47 : vector<2x128xf32>
    %c32_i32 = arith.constant 32 : i32
    %49 = tpu.dynamic_rotate %48 by %c32_i32 dim 1 : vector<2x128xf32>, i32 -> vector<2x128xf32>
    %50 = arith.addf %48, %49 : vector<2x128xf32>
    %c64_i32 = arith.constant 64 : i32
    %51 = tpu.dynamic_rotate %50 by %c64_i32 dim 1 : vector<2x128xf32>, i32 -> vector<2x128xf32>
    %52 = arith.addf %50, %51 : vector<2x128xf32>
    %cst_19 = arith.constant 3.906250e-03 : f32
    %53 = vector.broadcast %cst_19 : f32 to vector<2x128xf32>
    %54 = arith.mulf %52, %53 : vector<2x128xf32>
    %55 = vector.shape_cast %54 : vector<2x128xf32> to vector<2x1x128xf32>
    %56 = vector.broadcast %55 : vector<2x1x128xf32> to vector<2x16x128xf32>
    %57 = arith.subf %43, %56 : vector<2x16x128xf32>
    %58 = arith.mulf %57, %57 : vector<2x16x128xf32>
    %cst_20 = arith.constant dense<0.000000e+00> : vector<2x128xf32>
    %59 = vector.multi_reduction <add>, %58, %cst_20 [1] : vector<2x16x128xf32> to vector<2x128xf32>
    %c8_i32_21 = arith.constant 8 : i32
    %60 = tpu.dynamic_rotate %59 by %c8_i32_21 dim 1 : vector<2x128xf32>, i32 -> vector<2x128xf32>
    %61 = arith.addf %59, %60 : vector<2x128xf32>
    %c16_i32_22 = arith.constant 16 : i32
    %62 = tpu.dynamic_rotate %61 by %c16_i32_22 dim 1 : vector<2x128xf32>, i32 -> vector<2x128xf32>
    %63 = arith.addf %61, %62 : vector<2x128xf32>
    %c32_i32_23 = arith.constant 32 : i32
    %64 = tpu.dynamic_rotate %63 by %c32_i32_23 dim 1 : vector<2x128xf32>, i32 -> vector<2x128xf32>
    %65 = arith.addf %63, %64 : vector<2x128xf32>
    %c64_i32_24 = arith.constant 64 : i32
    %66 = tpu.dynamic_rotate %65 by %c64_i32_24 dim 1 : vector<2x128xf32>, i32 -> vector<2x128xf32>
    %67 = arith.addf %65, %66 : vector<2x128xf32>
    %cst_25 = arith.constant 3.906250e-03 : f32
    %68 = vector.broadcast %cst_25 : f32 to vector<2x128xf32>
    %69 = arith.mulf %67, %68 : vector<2x128xf32>
    %70 = vector.shape_cast %69 : vector<2x128xf32> to vector<2x1x128xf32>
    %cst_26 = arith.constant 9.99999974E-6 : f32
    %71 = vector.broadcast %cst_26 : f32 to vector<2x1x128xf32>
    %72 = arith.addf %70, %71 : vector<2x1x128xf32>
    %73 = math.rsqrt %72 : vector<2x1x128xf32>
    %74 = vector.broadcast %73 : vector<2x1x128xf32> to vector<2x16x128xf32>
    %75 = arith.mulf %57, %74 : vector<2x16x128xf32>
    %76 = vector.shape_cast %75 : vector<2x16x128xf32> to vector<32x128xf32>
    %cst_27 = arith.constant 2.000000e-01 : f32
    %77 = vector.broadcast %cst_27 : f32 to vector<32x128xf32>
    %78 = arith.mulf %77, %76 : vector<32x128xf32>
    %79 = arith.maximumf %76, %78 : vector<32x128xf32>
    %c1_28 = arith.constant 1 : index
    %c0_29 = arith.constant 0 : index
    %c0_30 = arith.constant 0 : index
    %80 = vector.load %arg3[%c1_28, %c0_29, %c0_30] : memref<3x128x128xf32, #tpu.memory_space<vmem>>, vector<1x128x128xf32>
    %81 = vector.shape_cast %80 : vector<1x128x128xf32> to vector<128x128xf32>
    %cst_31 = arith.constant dense<0.000000e+00> : vector<32x128xf32>
    %82 = tpu.matmul %79, %81, %cst_31 {dimension_numbers = #tpu.dot_dimension_numbers<[1], [0], [0], [1], [0, 0, 1, 1], [], []>} : vector<32x128xf32>, vector<128x128xf32>, vector<32x128xf32> -> vector<32x128xf32>
    %c31_i32_32 = arith.constant 31 : i32
    %83 = tpu.dynamic_rotate %79 by %c31_i32_32 dim 0 : vector<32x128xf32>, i32 -> vector<32x128xf32>
    %cst_33 = arith.constant 0.000000e+00 : f32
    %84 = vector.shape_cast %21 : vector<32x1xi1> to vector<32x1xi1>
    %85 = vector.broadcast %84 : vector<32x1xi1> to vector<32x128xi1>
    %86 = vector.broadcast %cst_33 : f32 to vector<32x128xf32>
    %87 = arith.select %85, %86, %83 : vector<32x128xi1>, vector<32x128xf32>
    %c2_34 = arith.constant 2 : index
    %c0_35 = arith.constant 0 : index
    %c0_36 = arith.constant 0 : index
    %88 = vector.load %arg3[%c2_34, %c0_35, %c0_36] : memref<3x128x128xf32, #tpu.memory_space<vmem>>, vector<1x128x128xf32>
    %89 = vector.shape_cast %88 : vector<1x128x128xf32> to vector<128x128xf32>
    %cst_37 = arith.constant dense<0.000000e+00> : vector<32x128xf32>
    %90 = tpu.matmul %87, %89, %cst_37 {dimension_numbers = #tpu.dot_dimension_numbers<[1], [0], [0], [1], [0, 0, 1, 1], [], []>} : vector<32x128xf32>, vector<128x128xf32>, vector<32x128xf32> -> vector<32x128xf32>
    %91 = arith.addf %82, %90 : vector<32x128xf32>
    %c1_i32_38 = arith.constant 1 : i32
    %92 = tpu.dynamic_rotate %79 by %c1_i32_38 dim 0 : vector<32x128xf32>, i32 -> vector<32x128xf32>
    %cst_39 = arith.constant 0.000000e+00 : f32
    %93 = vector.shape_cast %19 : vector<32x1xi1> to vector<32x1xi1>
    %94 = vector.broadcast %93 : vector<32x1xi1> to vector<32x128xi1>
    %95 = vector.broadcast %cst_39 : f32 to vector<32x128xf32>
    %96 = arith.select %94, %95, %92 : vector<32x128xi1>, vector<32x128xf32>
    %c0_40 = arith.constant 0 : index
    %c0_41 = arith.constant 0 : index
    %c0_42 = arith.constant 0 : index
    %97 = vector.load %arg3[%c0_40, %c0_41, %c0_42] : memref<3x128x128xf32, #tpu.memory_space<vmem>>, vector<1x128x128xf32>
    %98 = vector.shape_cast %97 : vector<1x128x128xf32> to vector<128x128xf32>
    %cst_43 = arith.constant dense<0.000000e+00> : vector<32x128xf32>
    %99 = tpu.matmul %96, %98, %cst_43 {dimension_numbers = #tpu.dot_dimension_numbers<[1], [0], [0], [1], [0, 0, 1, 1], [], []>} : vector<32x128xf32>, vector<128x128xf32>, vector<32x128xf32> -> vector<32x128xf32>
    %100 = arith.addf %91, %99 : vector<32x128xf32>
    %101 = vector.shape_cast %100 : vector<32x128xf32> to vector<2x16x128xf32>
    %cst_44 = arith.constant dense<0.000000e+00> : vector<2x128xf32>
    %102 = vector.multi_reduction <add>, %101, %cst_44 [1] : vector<2x16x128xf32> to vector<2x128xf32>
    %c8_i32_45 = arith.constant 8 : i32
    %103 = tpu.dynamic_rotate %102 by %c8_i32_45 dim 1 : vector<2x128xf32>, i32 -> vector<2x128xf32>
    %104 = arith.addf %102, %103 : vector<2x128xf32>
    %c16_i32_46 = arith.constant 16 : i32
    %105 = tpu.dynamic_rotate %104 by %c16_i32_46 dim 1 : vector<2x128xf32>, i32 -> vector<2x128xf32>
    %106 = arith.addf %104, %105 : vector<2x128xf32>
    %c32_i32_47 = arith.constant 32 : i32
    %107 = tpu.dynamic_rotate %106 by %c32_i32_47 dim 1 : vector<2x128xf32>, i32 -> vector<2x128xf32>
    %108 = arith.addf %106, %107 : vector<2x128xf32>
    %c64_i32_48 = arith.constant 64 : i32
    %109 = tpu.dynamic_rotate %108 by %c64_i32_48 dim 1 : vector<2x128xf32>, i32 -> vector<2x128xf32>
    %110 = arith.addf %108, %109 : vector<2x128xf32>
    %cst_49 = arith.constant 3.906250e-03 : f32
    %111 = vector.broadcast %cst_49 : f32 to vector<2x128xf32>
    %112 = arith.mulf %110, %111 : vector<2x128xf32>
    %113 = vector.shape_cast %112 : vector<2x128xf32> to vector<2x1x128xf32>
    %114 = vector.broadcast %113 : vector<2x1x128xf32> to vector<2x16x128xf32>
    %115 = arith.subf %101, %114 : vector<2x16x128xf32>
    %116 = arith.mulf %115, %115 : vector<2x16x128xf32>
    %cst_50 = arith.constant dense<0.000000e+00> : vector<2x128xf32>
    %117 = vector.multi_reduction <add>, %116, %cst_50 [1] : vector<2x16x128xf32> to vector<2x128xf32>
    %c8_i32_51 = arith.constant 8 : i32
    %118 = tpu.dynamic_rotate %117 by %c8_i32_51 dim 1 : vector<2x128xf32>, i32 -> vector<2x128xf32>
    %119 = arith.addf %117, %118 : vector<2x128xf32>
    %c16_i32_52 = arith.constant 16 : i32
    %120 = tpu.dynamic_rotate %119 by %c16_i32_52 dim 1 : vector<2x128xf32>, i32 -> vector<2x128xf32>
    %121 = arith.addf %119, %120 : vector<2x128xf32>
    %c32_i32_53 = arith.constant 32 : i32
    %122 = tpu.dynamic_rotate %121 by %c32_i32_53 dim 1 : vector<2x128xf32>, i32 -> vector<2x128xf32>
    %123 = arith.addf %121, %122 : vector<2x128xf32>
    %c64_i32_54 = arith.constant 64 : i32
    %124 = tpu.dynamic_rotate %123 by %c64_i32_54 dim 1 : vector<2x128xf32>, i32 -> vector<2x128xf32>
    %125 = arith.addf %123, %124 : vector<2x128xf32>
    %cst_55 = arith.constant 3.906250e-03 : f32
    %126 = vector.broadcast %cst_55 : f32 to vector<2x128xf32>
    %127 = arith.mulf %125, %126 : vector<2x128xf32>
    %128 = vector.shape_cast %127 : vector<2x128xf32> to vector<2x1x128xf32>
    %cst_56 = arith.constant 9.99999974E-6 : f32
    %129 = vector.broadcast %cst_56 : f32 to vector<2x1x128xf32>
    %130 = arith.addf %128, %129 : vector<2x1x128xf32>
    %131 = math.rsqrt %130 : vector<2x1x128xf32>
    %132 = vector.broadcast %131 : vector<2x1x128xf32> to vector<2x16x128xf32>
    %133 = arith.mulf %115, %132 : vector<2x16x128xf32>
    %134 = vector.shape_cast %133 : vector<2x16x128xf32> to vector<32x128xf32>
    %cst_57 = arith.constant 2.000000e-01 : f32
    %135 = vector.broadcast %cst_57 : f32 to vector<32x128xf32>
    %136 = arith.mulf %135, %134 : vector<32x128xf32>
    %137 = arith.maximumf %134, %136 : vector<32x128xf32>
    %c0_58 = arith.constant 0 : index
    %c0_59 = arith.constant 0 : index
    %138 = vector.load %arg4[%c0_58, %c0_59] : memref<64x128xf32, #tpu.memory_space<vmem>>, vector<64x128xf32>
    %cst_60 = arith.constant dense<0.000000e+00> : vector<32x128xf32>
    %139 = tpu.matmul %0, %138, %cst_60 {dimension_numbers = #tpu.dot_dimension_numbers<[1], [0], [0], [1], [0, 0, 1, 1], [], []>} : vector<32x64xf32>, vector<64x128xf32>, vector<32x128xf32> -> vector<32x128xf32>
    %c0_61 = arith.constant 0 : index
    %c0_62 = arith.constant 0 : index
    %140 = vector.load %arg5[%c0_61, %c0_62] : memref<1x128xf32, #tpu.memory_space<vmem>>, vector<1x128xf32>
    %141 = vector.broadcast %140 : vector<1x128xf32> to vector<32x128xf32>
    %142 = arith.addf %139, %141 : vector<32x128xf32>
    %143 = arith.addf %142, %137 : vector<32x128xf32>
    %c0_63 = arith.constant 0 : index
    %c0_64 = arith.constant 0 : index
    %144 = vector.load %arg6[%c0_63, %c0_64] : memref<32x128xf32, #tpu.memory_space<vmem>>, vector<32x128xf32>
    tpu.vector_store %arg6[%c0_63, %c0_64], %143 {strides = array<i32>} : memref<32x128xf32, #tpu.memory_space<vmem>>, vector<32x128xf32>,
    return
  }
  func.func @transform_0(%arg0: i32) -> (i32, i32) {
    %c0_i32 = arith.constant 0 : i32
    %c0_i32_0 = arith.constant 0 : i32
    return %arg0, %c0_i32 : i32, i32
  }
  func.func @transform_1(%arg0: i32) -> (i32, i32, i32) {
    %c0_i32 = arith.constant 0 : i32
    %c0_i32_0 = arith.constant 0 : i32
    %c0_i32_1 = arith.constant 0 : i32
    %c0_i32_2 = arith.constant 0 : i32
    return %c0_i32, %c0_i32_0, %c0_i32_1 : i32, i32, i32
  }
  func.func @transform_2(%arg0: i32) -> (i32, i32, i32) {
    %c0_i32 = arith.constant 0 : i32
    %c0_i32_0 = arith.constant 0 : i32
    %c0_i32_1 = arith.constant 0 : i32
    %c0_i32_2 = arith.constant 0 : i32
    return %c0_i32, %c0_i32_0, %c0_i32_1 : i32, i32, i32
  }
  func.func @transform_3(%arg0: i32) -> (i32, i32) {
    %c0_i32 = arith.constant 0 : i32
    %c0_i32_0 = arith.constant 0 : i32
    %c0_i32_1 = arith.constant 0 : i32
    return %c0_i32, %c0_i32_0 : i32, i32
  }
  func.func @transform_4(%arg0: i32) -> (i32, i32) {
    %c0_i32 = arith.constant 0 : i32
    %c0_i32_0 = arith.constant 0 : i32
    %c0_i32_1 = arith.constant 0 : i32
    return %c0_i32, %c0_i32_0 : i32, i32
  }
  func.func @transform_5(%arg0: i32) -> (i32, i32) {
    %c0_i32 = arith.constant 0 : i32
    %c0_i32_0 = arith.constant 0 : i32
    return %arg0, %c0_i32 : i32, i32
  }
}

</mosaic_0001>

<bundles_post_ra>
// kernel: residual_block_nchw.1
= control target key start
LH: loop header
LB: loop body
LE: loop exit
PB: predicated region body
PF: predicated region fallthrough
CT: control target
= control target key end

     0   :  { %v24_v0 = vlaneseq  ;;  %vm124_vm2 = vcmask 523264   ;;  %vm465_vm7 = vcmask 1041409   ;;  %s1642_s24 = smov 16   ;;  %s1643_s25 = smov 32   ;;  %s2175_s1 = inlined_call_operand.vmem [shape: f32[3,64,128], index: 1, kind: input, shape index: {}]   ;;  %s2176_s0 = inlined_call_operand.vmem [shape: f32[32,64], index: 0, kind: input, shape index: {}]   ;;  %s2177_s2 = inlined_call_operand.vmem [shape: f32[3,128,128], index: 2, kind: input, shape index: {}]   ;;  %s2178_s3 = inlined_call_operand.vmem [shape: f32[64,128], index: 3, kind: input, shape index: {}]   ;;  %s2179_s4 = inlined_call_operand.vmem [shape: f32[1,128], index: 4, kind: input, shape index: {}]   ;;  %s2180_s5 = inlined_call_operand.vmem [shape: f32[32,128], index: 5, kind: output, shape index: {}]  }
   0x1   :  { %v1258_v1 = vld [vmem:[%s2175_s1 + $0xb8] sm:$0xff]  ;;  %v1257_v3 = vld [vmem:[%s2175_s1 + $0xb0] sm:$0xff]  ;;  %v1256_v6 = vld [vmem:[%s2175_s1 + $0xa8] sm:$0xff]  ;;  %s1644_s26 = smov 64  }
   0x2   :  { %v1250_v2 = vld [vmem:[%s2175_s1 + $0x78] sm:$0xff]  ;;  %1424 = vmatprep.subr.mxu0 %v1258_v1  ;;  %v1249_v4 = vld [vmem:[%s2175_s1 + $0x70] sm:$0xff]  ;;  %v1687_v5 = vshrl.u32 %v24_v0, 7  ;;  %v1248_v7 = vld [vmem:[%s2175_s1 + $0x68] sm:$0xff] }
   0x3   :  { %1446 = vmatprep.subr.mxu1 %v1250_v2  ;;  %1425 = vmatpush3.msra.mxu0 %v1258_v1  ;;  %v1255_v8 = vld [vmem:[%s2175_s1 + $0xa0] sm:$0xff]  ;;  %v1254_v11 = vld [vmem:[%s2175_s1 + $0x98] sm:$0xff]  ;;  %v1708_v12 = vld [vmem:[%s2176_s0 + $0x8] sm:$0xff] }
   0x4   :  { %1447 = vmatpush3.msra.mxu1 %v1250_v2  ;;  %1426 = vmatprep.subr.mxu0 %v1257_v3  ;;  %v1247_v9 = vld [vmem:[%s2175_s1 + $0x60] sm:$0xff]  ;;  %v26_v10 = vadd.s32 8, %v1687_v5  ;;  %v1246_v13 = vld [vmem:[%s2175_s1 + $0x58] sm:$0xff]  ;;  %v1721_v15 = vld [vmem:[%s2176_s0 + $0x10] sm:$0xff]  ;;  %v95_v18 = vrot.slane %v1708_v12, 1  ;;  %vm98_vm0 = vcmp.lt.s32.totalorder %v1687_v5, 7 }
   0x5   :  { %1448 = vmatprep.subr.mxu1 %v1249_v4  ;;  %1427 = vmatpush3.msra.mxu0 %v1257_v3  ;;  %v1716_v14 = vld [vmem:[%s2176_s0] sm:$0xff]  ;;  %v1253_v16 = vld [vmem:[%s2175_s1 + $0x90] sm:$0xff]  ;;  %v96_v20 = vrot.slane %v1721_v15, 1  ;;  %v1736_v22 = vld [vmem:[%s2176_s0 + $0x18] sm:$0xff]  ;;  %v28_v23 = vadd.s32 24, %v1687_v5  ;;  %v33_v33 = vand.u32 15, %v1687_v5 }
   0x6   :  { %1449 = vmatpush3.msra.mxu1 %v1249_v4  ;;  %1428 = vmatprep.subr.mxu0 %v1256_v6  ;;  %v1245_v17 = vld [vmem:[%s2175_s1 + $0x50] sm:$0xff]  ;;  %v40_v19 = vand.u32 15, %v26_v10  ;;  %v94_v21 = vrot.slane %v1716_v14, 1  ;;  %v1252_v24 = vld [vmem:[%s2175_s1 + $0x88] sm:$0xff]  ;;  %v1251_v26 = vld [vmem:[%s2175_s1 + $0x80] sm:$0xff]  ;;  %v97_v30 = vrot.slane %v1736_v22, 1 }
   0x7   :  { %1450 = vmatprep.subr.mxu1 %v1248_v7  ;;  %1429 = vmatpush3.msra.mxu0 %v1256_v6  ;;  %v1244_v25 = vld [vmem:[%s2175_s1 + $0x48] sm:$0xff]  ;;  %v1243_v27 = vld [vmem:[%s2175_s1 + $0x40] sm:$0xff]  ;;  %v100_v29 = vsel %vm98_vm0, %v95_v18, %v96_v20  ;;  %v54_v32 = vand.u32 15, %v28_v23  ;;  %v319_v34 = vrot.slane %v1716_v14, 7  ;;  %v322_v35 = vrot.slane %v1736_v22, 7  ;;  %v347_v37 = vld [vmem:[%s2175_s1 + $0x38] sm:$0xff] }
   0x8   :  { %1451 = vmatpush3.msra.mxu1 %v1248_v7  ;;  %1430 = vmatprep.subr.mxu0 %v1255_v8  ;;  %vm1751_vm1 = vcmp.eq.s32.totalorder %v40_v19, 15  ;;  %v101_v31 = vsel %vm98_vm0, %v94_v21, %v95_v18  ;;  %vm323_vm3 = vcmp.lt.s32.totalorder %v1687_v5, 1  ;;  %v99_v38 = vsel %vm98_vm0, %v96_v20, %v97_v30  ;;  %v346_v41 = vld [vmem:[%s2175_s1 + $0x30] sm:$0xff]  ;;  %v345_v44 = vld [vmem:[%s2175_s1 + $0x28] sm:$0xff]  ;;  %v344_v47 = vld [vmem:[%s2175_s1 + $0x20] sm:$0xff] }
   0x9   :  { %1452 = vmatprep.subr.mxu1 %v1247_v9  ;;  %1431 = vmatpush3.msra.mxu0 %v1255_v8  ;;  %v112_v36 = vsel %vm1751_vm1, 0.0, %v100_v29  ;;  %vm1774_vm4 = vcmp.eq.s32.totalorder %v54_v32, 15  ;;  %v102_v40 = vsel %vm98_vm0, %v97_v30, %v94_v21  ;;  %vm1786_vm5 = vcmp.eq.s32.totalorder %v33_v33, 0  ;;  %v343_v49 = vld [vmem:[%s2175_s1 + $0x18] sm:$0xff]  ;;  %v342_v50 = vld [vmem:[%s2175_s1 + $0x10] sm:$0xff]  ;;  %v341_v53 = vld [vmem:[%s2175_s1 + $0x8] sm:$0xff] }
   0xa   :  { %1453 = vmatpush3.msra.mxu1 %v1247_v9  ;;  %1432 = vmatprep.subr.mxu0 %v1254_v11  ;;  %v327_v43 = vsel %vm323_vm3, %v322_v35, %v319_v34  ;;  %v114_v45 = vsel %vm1774_vm4, 0.0, %v102_v40  ;;  %v27_v48 = vadd.s32 16, %v1687_v5  ;;  %v321_v52 = vrot.slane %v1721_v15, 7  ;;  %v340_v55 = vld [vmem:[%s2175_s1] sm:$0xff]  ;;  %s1641_s1 = smov 8   ;;  %vm1303_vm8 = vmneg %vm1751_vm1  ;;  %v866_v28 = vld [vmem:[%s2177_s2 + $0x70] sm:$0xff] }
   0xb   :  { %1454 = vmatprep.subr.mxu1 %v1246_v13  ;;  %1433 = vmatpush3.msra.mxu0 %v1254_v11  ;;  %v336_v46 = vsel %vm1786_vm5, 0.0, %v327_v43  ;;  %v320_v54 = vrot.slane %v1708_v12, 7  ;;  %vm1305_vm9 = vmneg %vm1774_vm4  ;;  %v862_v42 = vld [vmem:[%s2177_s2 + $0x50] sm:$0xff] }
   0xc   :  { %1455 = vmatpush3.msra.mxu1 %v1246_v13  ;;  %1434 = vmatprep.subr.mxu0 %v1253_v16  ;;  %v47_v51 = vand.u32 15, %v27_v48  ;;  %v324_v60 = vsel %vm323_vm3, %v321_v52, %v322_v35  ;;  %vm1307_vm10 = vmneg %vm1786_vm5 }
   0xd   :  { %1456 = vmatprep.subr.mxu1 %v1245_v17  ;;  %1435 = vmatpush3.msra.mxu0 %v1253_v16  ;;  %v325_v57 = vsel %vm323_vm3, %v320_v54, %v321_v52  ;;  %v326_v58 = vsel %vm323_vm3, %v319_v34, %v320_v54 }
   0xe   :  { %1457 = vmatpush3.msra.mxu1 %v1245_v17  ;;  %1436 = vmatprep.subr.mxu0 %v1252_v24  ;;  %vm1824_vm6 = vcmp.eq.s32.totalorder %v47_v51, 0 }
   0xf   :  { %1458 = vmatprep.subr.mxu1 %v1244_v25  ;;  %1437 = vmatpush3.msra.mxu0 %v1252_v24  ;;  %v338_v59 = vsel %vm1824_vm6, 0.0, %v325_v57  ;;  %v1848_v57 = vsub.s32 0, %v1687_v5  ;;  %vm1309_vm11 = vmneg %vm1824_vm6 }
  0x10   :  { %1459 = vmatpush3.msra.mxu1 %v1244_v25  ;;  %1438 = vmatprep.subr.mxu0 %v1251_v26 }
  0x11   :  { %1460 = vmatprep.subr.mxu1 %v1243_v27  ;;  %1439 = vmatpush3.msra.mxu0 %v1251_v26 }
  0x12   :  { %1440 = vmatprep.mubr.msk.f32.mxu0 %vm124_vm2, %v101_v31  ;;  %1461 = vmatpush3.msra.mxu1 %v1243_v27 }
  0x13   :  { %1462 = vmatprep.mubr.msk.f32.mxu1 %vm124_vm2, %v1716_v14  ;;  %1441 = vmatmul.mubr.msk.f32.vlgmr.msra.gmra.mxu0 %vm124_vm2, %v112_v36 }
  0x14   :  { %1463 = vmatmul.mubr.msk.f32.vlgmr.msra.gmra.mxu1 %vm124_vm2, %v1708_v12  ;;  %1468 = vmatprep.subr.mxu0 %v347_v37 }
  0x15   :  { %1443 = vmatprep.mubr.msk.f32.mxu0 %vm124_vm2, %v99_v38  ;;  %1469 = vmatpush3.msra.mxu0 %v347_v37 }
  0x16   :  { %1465 = vmatprep.mubr.msk.f32.mxu1 %vm124_vm2, %v1721_v15  ;;  %1470 = vmatprep.subr.mxu0 %v346_v41 }
  0x17   :  { %1471 = vmatpush3.msra.mxu0 %v346_v41 }
  0x18   :  { %1466 = vmatmul.mubr.msk.f32.gmra.mxu1 %vm124_vm2, %v1736_v22  ;;  %1472 = vmatprep.subr.mxu0 %v345_v44 }
  0x19   :  { %1444 = vmatmul.mubr.msk.f32.gmra.mxu0 %vm124_vm2, %v114_v45 }
  0x1a   :  { %1473 = vmatpush3.msra.mxu0 %v345_v44  ;;  %1484 = vmatprep.mubr.msk.f32.mxu0 %vm124_vm2, %v336_v46 }
  0x1b   :  { %1474 = vmatprep.subr.mxu0 %v344_v47 }
  0x1c   :  { %1475 = vmatpush3.msra.mxu0 %v344_v47 }
  0x1d   :  { %1476 = vmatprep.subr.mxu0 %v343_v49 }
  0x1e   :  { %1477 = vmatpush3.msra.mxu0 %v343_v49 }
  0x1f   :  { %1478 = vmatprep.subr.mxu0 %v342_v50 }
  0x20   :  { %1479 = vmatpush3.msra.mxu0 %v342_v50 }
  0x21   :  { %1480 = vmatprep.subr.mxu0 %v341_v53 }
  0x22   :  { %1481 = vmatpush3.msra.mxu0 %v341_v53 }
  0x23   :  { %1482 = vmatprep.subr.mxu0 %v340_v55 }
  0x24   :  { %1483 = vmatpush3.msra.mxu0 %v340_v55 }
  0x25   :  { %1485 = vmatmul.mubr.msk.f32.vlgmr.msra.gmra.mxu0 %vm124_vm2, %v326_v58 }
  0x26   :  { %1487 = vmatprep.mubr.msk.f32.mxu0 %vm124_vm2, %v338_v59 }
  0x29   :  { %1488 = vmatmul.mubr.msk.f32.gmra.mxu0 %vm124_vm2, %v324_v60 }
  0xd3   :  { %v1442_v61 = vpop.f32.mrf.mxu0 }
  0xd4   :  { %v1464_v62 = vpop.f32.mrf.mxu1 }
  0xd5   :  { %v203_v63 = vpop.f32.mrf.mxu0  ;;  %v306_v6 = vadd.f32 %v1464_v62, %v1442_v61 }
  0xd6   :  { %v300_v1 = vpop.f32.mrf.mxu1 }
  0xd7   :  { %v301_v7 = vadd.f32 %v300_v1, %v203_v63 }
  0xd8   :  { %v1467_v2 = vpop.f32.mrf.mxu1 }
  0xd9   :  { %v1445_v0 = vpop.f32.mrf.mxu0 }
  0xda   :  { %v310_v8 = vpop.f32.mrf.mxu1  ;;  %v316_v13 = vadd.f32 %v1467_v2, %v1445_v0 }
  0xdb   :  { %v213_v3 = vpop.f32.mrf.mxu0 }
  0xdc   :  { %v311_v15 = vadd.f32 %v310_v8, %v213_v3 }
  0xe5   :  { %v1486_v4 = vpop.f32.mrf.mxu0 }
  0xe6   :  { %v446_v10 = vadd.f32 %v1486_v4, %v306_v6 }
  0xe7   :  { %v426_v9 = vpop.f32.mrf.mxu0 }
  0xe8   :  { %v445_v11 = vadd.f32 %v426_v9, %v301_v7 }
  0xe9   :  { %v1489_v12 = vpop.f32.mrf.mxu0 }
  0xea   :  { %v449_v16 = vadd.f32 %v446_v10, %v445_v11  ;;  %v448_v19 = vadd.f32 %v1489_v12, %v316_v13 }
  0xeb   :  { %v436_v17 = vpop.f32.mrf.mxu0 }
  0xec   :  { %v450_v18 = vrot.slane %v449_v16, 4  ;;  %v447_v20 = vadd.f32 %v436_v17, %v311_v15 }
  0xee   :  { %v451_v21 = vadd.f32 %v450_v18, %v449_v16  ;;  %v456_v22 = vadd.f32 %v448_v19, %v447_v20 }
  0xf0   :  { %v452_v23 = vrot.slane %v451_v21, 2  ;;  %v457_v24 = vrot.slane %v456_v22, 4 }
  0xf2   :  { %v453_v25 = vadd.f32 %v452_v23, %v451_v21  ;;  %v458_v26 = vadd.f32 %v457_v24, %v456_v22 }
  0xf4   :  { %v459_v27 = vrot.slane %v458_v26, 2  ;;  %v454_v30 = vrot.slane %v453_v25, 1 }
  0xf6   :  { %v460_v29 = vadd.f32 %v459_v27, %v458_v26  ;;  %v455_v32 = vadd.f32 %v454_v30, %v453_v25 }
  0xf8   :  { %v461_v31 = vrot.slane %v460_v29, 1 }
  0xfa   :  { %v462_v33 = vadd.f32 %v461_v31, %v460_v29 }
  0xfc   :  { %v466_v34 = vsel %vm465_vm7, %v462_v33, %v455_v32 }
  0xfd   :  { %468 = vrot.lane.b32.xlu0 %v466_v34, %s1641_s1 }
 0x16f   :  { %v469_v35 = vpop.permute.xlu0 %468 }
 0x170   :  { %v471_v36 = vrot.slane %v469_v35, 1  ;;  %v474_v38 = vadd.f32 %v469_v35, %v455_v32 }
 0x172   :  { %v475_v37 = vadd.f32 %v471_v36, %v462_v33  ;;  %v1286_v36 = vld [vmem:[%s2177_s2 + $0xf8] sm:$0xff] }
 0x173   :  { %1528 = vmatprep.subr.mxu0 %v1286_v36 }
 0x174   :  { %v478_v40 = vrot.slane %v475_v37, 7  ;;  %1529 = vmatpush3.msra.mxu0 %v1286_v36 }
 0x176   :  { %v479_v41 = vsel %vm465_vm7, %v478_v40, %v474_v38 }
 0x177   :  { %481 = vrot.lane.b32.xlu0 %v479_v41, %s1642_s24 }
 0x1e9   :  { %v482_v43 = vpop.permute.xlu0 %481 }
 0x1ea   :  { %v484_v44 = vrot.slane %v482_v43, 1  ;;  %v487_v46 = vadd.f32 %v482_v43, %v474_v38  ;;  %v1302_v43 = vld [vmem:[%s2177_s2 + $0x178] sm:$0xff] }
 0x1eb   :  { %1490 = vmatprep.subr.mxu1 %v1302_v43 }
 0x1ec   :  { %v488_v45 = vadd.f32 %v484_v44, %v475_v37  ;;  %v1285_v37 = vld [vmem:[%s2177_s2 + $0xf0] sm:$0xff]  ;;  %v1284_v44 = vld [vmem:[%s2177_s2 + $0xe8] sm:$0xff]  ;;  %1491 = vmatpush3.msra.mxu1 %v1302_v43 }
 0x1ed   :  { %1530 = vmatprep.subr.mxu0 %v1285_v37 }
 0x1ee   :  { %v491_v47 = vrot.slane %v488_v45, 7  ;;  %1531 = vmatpush3.msra.mxu0 %v1285_v37 }
 0x1ef   :  { %1532 = vmatprep.subr.mxu0 %v1284_v44 }
 0x1f0   :  { %v492_v48 = vsel %vm465_vm7, %v491_v47, %v487_v46  ;;  %1533 = vmatpush3.msra.mxu0 %v1284_v44  ;;  %v1300_v47 = vld [vmem:[%s2177_s2 + $0x168] sm:$0xff] }
 0x1f1   :  { %494 = vrot.lane.b32.xlu1 %v492_v48, %s1643_s25  ;;  %v1282_v48 = vld [vmem:[%s2177_s2 + $0xd8] sm:$0xff] }
 0x263   :  { %v495_v49 = vpop.permute.xlu1 %494 }
 0x264   :  { %v497_v50 = vrot.slane %v495_v49, 1  ;;  %v500_v52 = vadd.f32 %v495_v49, %v487_v46  ;;  %v1283_v46 = vld [vmem:[%s2177_s2 + $0xe0] sm:$0xff] }
 0x265   :  { %1534 = vmatprep.subr.mxu0 %v1283_v46 }
 0x266   :  { %v501_v51 = vadd.f32 %v497_v50, %v488_v45  ;;  %v1301_v45 = vld [vmem:[%s2177_s2 + $0x170] sm:$0xff]  ;;  %1535 = vmatpush3.msra.mxu0 %v1283_v46  ;;  %v1299_v50 = vld [vmem:[%s2177_s2 + $0x160] sm:$0xff] }
 0x267   :  { %1492 = vmatprep.subr.mxu1 %v1301_v45  ;;  %1536 = vmatprep.subr.mxu0 %v1282_v48 }
 0x268   :  { %v504_v53 = vrot.slane %v501_v51, 7  ;;  %1493 = vmatpush3.msra.mxu1 %v1301_v45  ;;  %1537 = vmatpush3.msra.mxu0 %v1282_v48 }
 0x269   :  { %1494 = vmatprep.subr.mxu1 %v1300_v47 }
 0x26a   :  { %v505_v54 = vsel %vm465_vm7, %v504_v53, %v500_v52  ;;  %1495 = vmatpush3.msra.mxu1 %v1300_v47  ;;  %v1298_v53 = vld [vmem:[%s2177_s2 + $0x158] sm:$0xff] }
 0x26b   :  { %507 = vrot.lane.b32.xlu1 %v505_v54, %s1644_s26  ;;  %1496 = vmatprep.subr.mxu1 %v1299_v50 }
 0x26c   :  { %1497 = vmatpush3.msra.mxu1 %v1299_v50 }
 0x26d   :  { %1498 = vmatprep.subr.mxu1 %v1298_v53 }
 0x26e   :  { %1499 = vmatpush3.msra.mxu1 %v1298_v53 }
 0x2dd   :  { %v508_v55 = vpop.permute.xlu1 %507 }
 0x2de   :  { %v510_v58 = vrot.slane %v508_v55, 1  ;;  %v513_v59 = vadd.f32 %v508_v55, %v500_v52  ;;  %v1281_v52 = vld [vmem:[%s2177_s2 + $0xd0] sm:$0xff]  ;;  %v1280_v55 = vld [vmem:[%s2177_s2 + $0xc8] sm:$0xff] }
 0x2df   :  { %1538 = vmatprep.subr.mxu0 %v1281_v52 }
 0x2e0   :  { %v514_v60 = vadd.f32 %v510_v58, %v501_v51  ;;  %v515_v61 = vmul.f32 0.00390625, %v513_v59  ;;  %1539 = vmatpush3.msra.mxu0 %v1281_v52  ;;  %v1297_v58 = vld [vmem:[%s2177_s2 + $0x150] sm:$0xff]  ;;  %v1279_v59 = vld [vmem:[%s2177_s2 + $0xc0] sm:$0xff] }
 0x2e1   :  { %1540 = vmatprep.subr.mxu0 %v1280_v55  ;;  %1500 = vmatprep.subr.mxu1 %v1297_v58 }
 0x2e2   :  { %v516_v62 = vmul.f32 0.00390625, %v514_v60  ;;  %v520_v63 = vrot.slane %v515_v61, %v1848_v57  ;;  %v1296_v60 = vld [vmem:[%s2177_s2 + $0x148] sm:$0xff]  ;;  %1541 = vmatpush3.msra.mxu0 %v1280_v55  ;;  %1501 = vmatpush3.msra.mxu1 %v1297_v58 }
 0x2e3   :  { %1542 = vmatprep.subr.mxu0 %v1279_v59  ;;  %1502 = vmatprep.subr.mxu1 %v1296_v60  ;;  %v865_v55 = vld [vmem:[%s2177_s2 + $0x68] sm:$0xff] }
 0x2e4   :  { %v524_v0 = vrot.slane %v516_v62, %v1848_v57  ;;  %v1852_v1 = vsub.f32 %v445_v11, %v520_v63  ;;  %v1854_v2 = vsub.f32 %v446_v10, %v520_v63  ;;  %v1278_v63 = vld [vmem:[%s2177_s2 + $0xb8] sm:$0xff]  ;;  %1543 = vmatpush3.msra.mxu0 %v1279_v59  ;;  %1503 = vmatpush3.msra.mxu1 %v1296_v60  ;;  %v864_v60 = vld [vmem:[%s2177_s2 + $0x60] sm:$0xff] }
 0x2e5   :  { %1544 = vmatprep.subr.mxu0 %v1278_v63 }
 0x2e6   :  { %v1856_v3 = vsub.f32 %v447_v20, %v524_v0  ;;  %v1858_v4 = vsub.f32 %v448_v19, %v524_v0  ;;  %v529_v6 = vmul.f32 %v1852_v1, %v1852_v1  ;;  %v530_v7 = vmul.f32 %v1854_v2, %v1854_v2  ;;  %v1295_v0 = vld [vmem:[%s2177_s2 + $0x140] sm:$0xff]  ;;  %1545 = vmatpush3.msra.mxu0 %v1278_v63  ;;  %v859_v63 = vld [vmem:[%s2177_s2 + $0x38] sm:$0xff] }
 0x2e7   :  { %1504 = vmatprep.subr.mxu1 %v1295_v0 }
 0x2e8   :  { %v531_v8 = vmul.f32 %v1856_v3, %v1856_v3  ;;  %v532_v9 = vmul.f32 %v1858_v4, %v1858_v4  ;;  %v533_v11 = vadd.f32 %v530_v7, %v529_v6  ;;  %v1277_v7 = vld [vmem:[%s2177_s2 + $0xb0] sm:$0xff]  ;;  %1505 = vmatpush3.msra.mxu1 %v1295_v0 }
 0x2e9   :  { %1546 = vmatprep.subr.mxu0 %v1277_v7  ;;  %v858_v0 = vld [vmem:[%s2177_s2 + $0x30] sm:$0xff] }
 0x2ea   :  { %v534_v12 = vrot.slane %v533_v11, 4  ;;  %v540_v10 = vadd.f32 %v532_v9, %v531_v8  ;;  %v1294_v8 = vld [vmem:[%s2177_s2 + $0x138] sm:$0xff]  ;;  %v1276_v9 = vld [vmem:[%s2177_s2 + $0xa8] sm:$0xff]  ;;  %1547 = vmatpush3.msra.mxu0 %v1277_v7  ;;  %v856_v7 = vld [vmem:[%s2177_s2 + $0x20] sm:$0xff] }
 0x2eb   :  { %1506 = vmatprep.subr.mxu1 %v1294_v8  ;;  %1548 = vmatprep.subr.mxu0 %v1276_v9 }
 0x2ec   :  { %v535_v13 = vadd.f32 %v534_v12, %v533_v11  ;;  %v541_v15 = vrot.slane %v540_v10, 4  ;;  %v1293_v11 = vld [vmem:[%s2177_s2 + $0x130] sm:$0xff]  ;;  %1507 = vmatpush3.msra.mxu1 %v1294_v8  ;;  %v1275_v12 = vld [vmem:[%s2177_s2 + $0xa0] sm:$0xff]  ;;  %1549 = vmatpush3.msra.mxu0 %v1276_v9  ;;  %v855_v8 = vld [vmem:[%s2177_s2 + $0x18] sm:$0xff] }
 0x2ed   :  { %1508 = vmatprep.subr.mxu1 %v1293_v11  ;;  %1550 = vmatprep.subr.mxu0 %v1275_v12  ;;  %v854_v9 = vld [vmem:[%s2177_s2 + $0x10] sm:$0xff] }
 0x2ee   :  { %v536_v16 = vrot.slane %v535_v13, 2  ;;  %v542_v17 = vadd.f32 %v541_v15, %v540_v10  ;;  %v1292_v10 = vld [vmem:[%s2177_s2 + $0x128] sm:$0xff]  ;;  %1509 = vmatpush3.msra.mxu1 %v1293_v11  ;;  %v1291_v15 = vld [vmem:[%s2177_s2 + $0x120] sm:$0xff]  ;;  %1551 = vmatpush3.msra.mxu0 %v1275_v12 }
 0x2ef   :  { %1510 = vmatprep.subr.mxu1 %v1292_v10  ;;  %v853_v11 = vld [vmem:[%s2177_s2 + $0x8] sm:$0xff]  ;;  %v852_v12 = vld [vmem:[%s2177_s2] sm:$0xff] }
 0x2f0   :  { %v537_v18 = vadd.f32 %v536_v16, %v535_v13  ;;  %v543_v19 = vrot.slane %v542_v17, 2  ;;  %v1274_v13 = vld [vmem:[%s2177_s2 + $0x98] sm:$0xff]  ;;  %1511 = vmatpush3.msra.mxu1 %v1292_v10  ;;  %v1273_v16 = vld [vmem:[%s2177_s2 + $0x90] sm:$0xff] }
 0x2f1   :  { %1552 = vmatprep.subr.mxu0 %v1274_v13  ;;  %1512 = vmatprep.subr.mxu1 %v1291_v15 }
 0x2f2   :  { %v538_v20 = vrot.slane %v537_v18, 1  ;;  %v544_v21 = vadd.f32 %v543_v19, %v542_v17  ;;  %v1290_v17 = vld [vmem:[%s2177_s2 + $0x118] sm:$0xff]  ;;  %1553 = vmatpush3.msra.mxu0 %v1274_v13  ;;  %1513 = vmatpush3.msra.mxu1 %v1291_v15  ;;  %v1289_v19 = vld [vmem:[%s2177_s2 + $0x110] sm:$0xff] }
 0x2f3   :  { %1554 = vmatprep.subr.mxu0 %v1273_v16  ;;  %1514 = vmatprep.subr.mxu1 %v1290_v17 }
 0x2f4   :  { %v545_v22 = vrot.slane %v544_v21, 1  ;;  %v539_v23 = vadd.f32 %v538_v20, %v537_v18  ;;  %v1272_v18 = vld [vmem:[%s2177_s2 + $0x88] sm:$0xff]  ;;  %1555 = vmatpush3.msra.mxu0 %v1273_v16  ;;  %1515 = vmatpush3.msra.mxu1 %v1290_v17  ;;  %v1271_v20 = vld [vmem:[%s2177_s2 + $0x80] sm:$0xff] }
 0x2f5   :  { %1556 = vmatprep.subr.mxu0 %v1272_v18  ;;  %1516 = vmatprep.subr.mxu1 %v1289_v19 }
 0x2f6   :  { %v546_v24 = vadd.f32 %v545_v22, %v544_v21  ;;  %v1288_v21 = vld [vmem:[%s2177_s2 + $0x108] sm:$0xff]  ;;  %1557 = vmatpush3.msra.mxu0 %v1272_v18  ;;  %1517 = vmatpush3.msra.mxu1 %v1289_v19  ;;  %v1287_v22 = vld [vmem:[%s2177_s2 + $0x100] sm:$0xff] }
 0x2f7   :  { %1558 = vmatprep.subr.mxu0 %v1271_v20  ;;  %1518 = vmatprep.subr.mxu1 %v1288_v21 }
 0x2f8   :  { %v549_v25 = vsel %vm465_vm7, %v546_v24, %v539_v23  ;;  %1559 = vmatpush3.msra.mxu0 %v1271_v20  ;;  %1519 = vmatpush3.msra.mxu1 %v1288_v21 }
 0x2f9   :  { %551 = vrot.lane.b32.xlu0 %v549_v25, %s1641_s1  ;;  %1520 = vmatprep.subr.mxu1 %v1287_v22 }
 0x2fa   :  { %1521 = vmatpush3.msra.mxu1 %v1287_v22 }
 0x36b   :  { %v552_v26 = vpop.permute.xlu0 %551 }
 0x36c   :  { %v554_v27 = vrot.slane %v552_v26, 1  ;;  %v557_v30 = vadd.f32 %v552_v26, %v539_v23  ;;  %v867_v23 = vld [vmem:[%s2177_s2 + $0x78] sm:$0xff] }
 0x36d   :  { %1566 = vmatprep.subr.mxu1 %v867_v23 }
 0x36e   :  { %v558_v29 = vadd.f32 %v554_v27, %v546_v24 }
 0x370   :  { %v561_v31 = vrot.slane %v558_v29, 7 }
 0x372   :  { %v562_v32 = vsel %vm465_vm7, %v561_v31, %v557_v30 }
 0x373   :  { %564 = vrot.lane.b32.xlu1 %v562_v32, %s1642_s24 }
 0x3e5   :  { %v565_v33 = vpop.permute.xlu1 %564 }
 0x3e6   :  { %v567_v34 = vrot.slane %v565_v33, 1  ;;  %v570_v38 = vadd.f32 %v565_v33, %v557_v30 }
 0x3e8   :  { %v571_v35 = vadd.f32 %v567_v34, %v558_v29 }
 0x3ea   :  { %v574_v40 = vrot.slane %v571_v35, 7 }
 0x3ec   :  { %v575_v41 = vsel %vm465_vm7, %v574_v40, %v570_v38 }
 0x3ed   :  { %577 = vrot.lane.b32.xlu0 %v575_v41, %s1643_s25 }
 0x45f   :  { %v578_v49 = vpop.permute.xlu0 %577 }
 0x460   :  { %v580_v51 = vrot.slane %v578_v49, 1  ;;  %v1921_v61 = vadd.f32 %v578_v49, %v570_v38 }
 0x462   :  { %v1907_v54 = vadd.f32 %v580_v51, %v571_v35 }
 0x464   :  { %v587_v62 = vrot.slane %v1907_v54, 7 }
 0x466   :  { %v588_v6 = vsel %vm465_vm7, %v587_v62, %v1921_v61  ;;  %v860_v62 = vld [vmem:[%s2177_s2 + $0x40] sm:$0xff] }
 0x467   :  { %590 = vrot.lane.b32.xlu1 %v588_v6, %s1644_s26  ;;  %v857_v6 = vld [vmem:[%s2177_s2 + $0x28] sm:$0xff] }
 0x4d9   :  { %v591_v24 = vpop.permute.xlu1 %590 }
 0x4da   :  { %v593_v25 = vrot.slane %v591_v24, 1  ;;  %v596_v26 = vadd.f32 %v591_v24, %v1921_v61  ;;  %v861_v61 = vld [vmem:[%s2177_s2 + $0x48] sm:$0xff] }
 0x4dc   :  { %v597_v27 = vadd.f32 %v593_v25, %v1907_v54  ;;  %v598_v29 = vmul.f32 0.00390625, %v596_v26 }
 0x4de   :  { %v599_v30 = vmul.f32 0.00390625, %v597_v27  ;;  %v600_v31 = vadd.f32 1e-05, %v598_v29 }
 0x4e0   :  { %v601_v32 = vadd.f32 1e-05, %v599_v30  ;;  %1630 = vrsqrt.f32 %v600_v31 }
 0x4e2   :  { %1632 = vrsqrt.f32 %v601_v32 }
 0x4ed   :  { %v1631_v33 = vpop.eup %1630 }
 0x4ee   :  { %v607_v34 = vrot.slane %v1631_v33, %v1848_v57 }
 0x4ef   :  { %v1633_v35 = vpop.eup %1632 }
 0x4f0   :  { %v612_v36 = vmul.f32 %v607_v34, %v1852_v1  ;;  %v613_v37 = vmul.f32 %v607_v34, %v1854_v2  ;;  %v611_v38 = vrot.slane %v1633_v35, %v1848_v57 }
 0x4f2   :  { %v616_v40 = vmul.f32 0.2, %v612_v36  ;;  %v617_v41 = vmul.f32 0.2, %v613_v37  ;;  %v614_v43 = vmul.f32 %v611_v38, %v1856_v3  ;;  %v615_v44 = vmul.f32 %v611_v38, %v1858_v4 }
 0x4f4   :  { %v1989_v45 = vmax.f32 %v612_v36, %v616_v40  ;;  %v1991_v46 = vmax.f32 %v613_v37, %v617_v41  ;;  %v618_v47 = vmul.f32 0.2, %v614_v43  ;;  %v619_v48 = vmul.f32 0.2, %v615_v44 }
 0x4f6   :  { %1560 = vmatprep.mubr.f32.mxu0 %v1989_v45  ;;  %v1994_v49 = vmax.f32 %v614_v43, %v618_v47  ;;  %v641_v1 = vrot.slane %v1989_v45, 1  ;;  %v642_v2 = vrot.slane %v1991_v46, 1  ;;  %v1998_v50 = vmax.f32 %v615_v44, %v619_v48 }
 0x4f7   :  { %1561 = vmatmul.mubr.f32.vlgmr.msra.gmra.mxu0 %v1991_v46  ;;  %v840_v58 = vrot.slane %v1989_v45, 7  ;;  %v841_v10 = vrot.slane %v1991_v46, 7 }
 0x4f8   :  { %v643_v3 = vrot.slane %v1994_v49, 1  ;;  %1563 = vmatprep.mubr.f32.mxu0 %v1994_v49  ;;  %v647_v4 = vsel %vm98_vm0, %v641_v1, %v642_v2  ;;  %v644_v51 = vrot.slane %v1998_v50, 1  ;;  %v843_v54 = vrot.slane %v1998_v50, 7 }
 0x4f9   :  { %1522 = vmatprep.mubr.f32.mxu1 %v647_v4  ;;  %v842_v13 = vrot.slane %v1994_v49, 7  ;;  %v846_v15 = vsel %vm323_vm3, %v840_v58, %v841_v10 }
 0x4fa   :  { %v646_v52 = vsel %vm98_vm0, %v642_v2, %v643_v3  ;;  %v645_v53 = vsel %vm98_vm0, %v643_v3, %v644_v51  ;;  %v648_v59 = vsel %vm98_vm0, %v644_v51, %v641_v1  ;;  %v847_v39 = vsel %vm323_vm3, %v843_v54, %v840_v58 }
 0x4fb   :  { %1523 = vmatmul.mubr.msk.f32.vlgmr.msra.gmra.mxu1 %vm1303_vm8, %v646_v52  ;;  %1564 = vmatmul.mubr.f32.gmra.mxu0 %v1998_v50  ;;  %v845_v16 = vsel %vm323_vm3, %v841_v10, %v842_v13  ;;  %v844_v17 = vsel %vm323_vm3, %v842_v13, %v843_v54 }
 0x4fc   :  { %1567 = vmatpush3.msra.mxu1 %v867_v23  ;;  %1525 = vmatprep.mubr.f32.mxu1 %v645_v53 }
 0x4fd   :  { %1568 = vmatprep.subr.mxu1 %v866_v28  ;;  %1620 = vmatprep.mubr.msk.f32.mxu0 %vm124_vm2, %v1716_v14  ;;  %v863_v14 = vld [vmem:[%s2177_s2 + $0x58] sm:$0xff] }
 0x4fe   :  { %1569 = vmatpush3.msra.mxu1 %v866_v28 }
 0x4ff   :  { %1570 = vmatprep.subr.mxu1 %v865_v55  ;;  %1526 = vmatmul.mubr.msk.f32.gmra.mxu1 %vm1305_vm9, %v648_v59 }
 0x500   :  { %1571 = vmatpush3.msra.mxu1 %v865_v55  ;;  %1598 = vmatprep.mubr.msk.f32.mxu1 %vm1307_vm10, %v847_v39 }
 0x501   :  { %1572 = vmatprep.subr.mxu1 %v864_v60 }
 0x502   :  { %1573 = vmatpush3.msra.mxu1 %v864_v60 }
 0x503   :  { %1574 = vmatprep.subr.mxu1 %v863_v14 }
 0x504   :  { %1575 = vmatpush3.msra.mxu1 %v863_v14 }
 0x505   :  { %1576 = vmatprep.subr.mxu1 %v862_v42 }
 0x506   :  { %1577 = vmatpush3.msra.mxu1 %v862_v42 }
 0x507   :  { %1578 = vmatprep.subr.mxu1 %v861_v61 }
 0x508   :  { %1579 = vmatpush3.msra.mxu1 %v861_v61 }
 0x509   :  { %1580 = vmatprep.subr.mxu1 %v860_v62 }
 0x50a   :  { %1581 = vmatpush3.msra.mxu1 %v860_v62 }
 0x50b   :  { %1582 = vmatprep.subr.mxu1 %v859_v63 }
 0x50c   :  { %1583 = vmatpush3.msra.mxu1 %v859_v63 }
 0x50d   :  { %1584 = vmatprep.subr.mxu1 %v858_v0 }
 0x50e   :  { %1585 = vmatpush3.msra.mxu1 %v858_v0 }
 0x50f   :  { %1586 = vmatprep.subr.mxu1 %v857_v6 }
 0x510   :  { %1587 = vmatpush3.msra.mxu1 %v857_v6 }
 0x511   :  { %1588 = vmatprep.subr.mxu1 %v856_v7 }
 0x512   :  { %1589 = vmatpush3.msra.mxu1 %v856_v7 }
 0x513   :  { %1590 = vmatprep.subr.mxu1 %v855_v8 }
 0x514   :  { %1591 = vmatpush3.msra.mxu1 %v855_v8 }
 0x515   :  { %1592 = vmatprep.subr.mxu1 %v854_v9 }
 0x516   :  { %1593 = vmatpush3.msra.mxu1 %v854_v9 }
 0x517   :  { %1594 = vmatprep.subr.mxu1 %v853_v11 }
 0x518   :  { %1595 = vmatpush3.msra.mxu1 %v853_v11 }
 0x519   :  { %1596 = vmatprep.subr.mxu1 %v852_v12 }
 0x51a   :  { %1597 = vmatpush3.msra.mxu1 %v852_v12 }
 0x51b   :  { %1599 = vmatmul.mubr.f32.vlgmr.msra.gmra.mxu1 %v846_v15 }
 0x51c   :  { %1601 = vmatprep.mubr.msk.f32.mxu1 %vm1309_vm11, %v845_v16 }
 0x51f   :  { %1602 = vmatmul.mubr.f32.gmra.mxu1 %v844_v17 }
 0x5b7   :  { %v1562_v20 = vpop.f32.mrf.mxu0 }
 0x5b9   :  { %v821_v21 = vpop.f32.mrf.mxu0 }
 0x5bb   :  { %v1524_v18 = vpop.f32.mrf.mxu1  ;;  %v1565_v23 = vpop.f32.mrf.mxu0 }
 0x5bc   :  { %v827_v25 = vadd.f32 %v1562_v20, %v1524_v18 }
 0x5bd   :  { %v736_v19 = vpop.f32.mrf.mxu1  ;;  %v831_v31 = vpop.f32.mrf.mxu0 }
 0x5be   :  { %v822_v26 = vadd.f32 %v821_v21, %v736_v19 }
 0x5bf   :  { %v1527_v56 = vpop.f32.mrf.mxu1 }
 0x5c0   :  { %v837_v33 = vadd.f32 %v1565_v23, %v1527_v56 }
 0x5c1   :  { %v746_v22 = vpop.f32.mrf.mxu1 }
 0x5c2   :  { %v832_v34 = vadd.f32 %v831_v31, %v746_v22 }
 0x5db   :  { %v1600_v24 = vpop.f32.mrf.mxu1 }
 0x5dc   :  { %v954_v29 = vadd.f32 %v1600_v24, %v827_v25 }
 0x5dd   :  { %v934_v27 = vpop.f32.mrf.mxu1 }
 0x5de   :  { %v953_v30 = vadd.f32 %v934_v27, %v822_v26 }
 0x5df   :  { %v1603_v32 = vpop.f32.mrf.mxu1 }
 0x5e0   :  { %v957_v5 = vadd.f32 %v954_v29, %v953_v30  ;;  %v956_v37 = vadd.f32 %v1603_v32, %v837_v33 }
 0x5e1   :  { %v944_v35 = vpop.f32.mrf.mxu1 }
 0x5e2   :  { %v958_v36 = vrot.slane %v957_v5, 4  ;;  %v955_v38 = vadd.f32 %v944_v35, %v832_v34 }
 0x5e4   :  { %v959_v40 = vadd.f32 %v958_v36, %v957_v5  ;;  %v964_v41 = vadd.f32 %v956_v37, %v955_v38 }
 0x5e6   :  { %v960_v43 = vrot.slane %v959_v40, 2  ;;  %v965_v44 = vrot.slane %v964_v41, 4 }
 0x5e8   :  { %v961_v45 = vadd.f32 %v960_v43, %v959_v40  ;;  %v966_v46 = vadd.f32 %v965_v44, %v964_v41  ;;  %v1138_v43 = vld [vmem:[%s2178_s3 + $0x38] sm:$0xff]  ;;  %v1137_v44 = vld [vmem:[%s2178_s3 + $0x30] sm:$0xff] }
 0x5e9   :  { %1604 = vmatprep.subr.mxu0 %v1138_v43 }
 0x5ea   :  { %v967_v47 = vrot.slane %v966_v46, 2  ;;  %v962_v49 = vrot.slane %v961_v45, 1  ;;  %1605 = vmatpush3.msra.mxu0 %v1138_v43 }
 0x5eb   :  { %1606 = vmatprep.subr.mxu0 %v1137_v44 }
 0x5ec   :  { %v968_v48 = vadd.f32 %v967_v47, %v966_v46  ;;  %v963_v2 = vadd.f32 %v962_v49, %v961_v45  ;;  %v1136_v47 = vld [vmem:[%s2178_s3 + $0x28] sm:$0xff]  ;;  %1607 = vmatpush3.msra.mxu0 %v1137_v44  ;;  %v1135_v49 = vld [vmem:[%s2178_s3 + $0x20] sm:$0xff] }
 0x5ed   :  { %1608 = vmatprep.subr.mxu0 %v1136_v47 }
 0x5ee   :  { %v969_v1 = vrot.slane %v968_v48, 1  ;;  %1609 = vmatpush3.msra.mxu0 %v1136_v47 }
 0x5ef   :  { %1610 = vmatprep.subr.mxu0 %v1135_v49 }
 0x5f0   :  { %v970_v50 = vadd.f32 %v969_v1, %v968_v48  ;;  %v1134_v1 = vld [vmem:[%s2178_s3 + $0x18] sm:$0xff]  ;;  %1611 = vmatpush3.msra.mxu0 %v1135_v49 }
 0x5f1   :  { %1612 = vmatprep.subr.mxu0 %v1134_v1 }
 0x5f2   :  { %v973_v3 = vsel %vm465_vm7, %v970_v50, %v963_v2  ;;  %1613 = vmatpush3.msra.mxu0 %v1134_v1 }
 0x5f3   :  { %975 = vrot.lane.b32.xlu0 %v973_v3, %s1641_s1  ;;  %v1131_v3 = vld [vmem:[%s2178_s3] sm:$0xff] }
 0x665   :  { %v976_v4 = vpop.permute.xlu0 %975 }
 0x666   :  { %v978_v51 = vrot.slane %v976_v4, 1  ;;  %v981_v53 = vadd.f32 %v976_v4, %v963_v2  ;;  %v1133_v2 = vld [vmem:[%s2178_s3 + $0x10] sm:$0xff]  ;;  %v1638_v4 = vld [vmem:[%s2176_s0 + $0x8] sm:$0xff] }
 0x667   :  { %1614 = vmatprep.subr.mxu0 %v1133_v2 }
 0x668   :  { %v982_v52 = vadd.f32 %v978_v51, %v970_v50  ;;  %v1132_v50 = vld [vmem:[%s2178_s3 + $0x8] sm:$0xff]  ;;  %1615 = vmatpush3.msra.mxu0 %v1133_v2  ;;  %v1639_v51 = vld [vmem:[%s2176_s0 + $0x10] sm:$0xff] }
 0x669   :  { %1616 = vmatprep.subr.mxu0 %v1132_v50 }
 0x66a   :  { %v985_v28 = vrot.slane %v982_v52, 7  ;;  %1617 = vmatpush3.msra.mxu0 %v1132_v50 }
 0x66b   :  { %1618 = vmatprep.subr.mxu0 %v1131_v3 }
 0x66c   :  { %v986_v54 = vsel %vm465_vm7, %v985_v28, %v981_v53  ;;  %1619 = vmatpush3.msra.mxu0 %v1131_v3 }
 0x66d   :  { %988 = vrot.lane.b32.xlu1 %v986_v54, %s1642_s24  ;;  %1621 = vmatmul.mubr.msk.f32.vlgmr.msra.gmra.mxu0 %vm124_vm2, %v1638_v4 }
 0x66e   :  { %1623 = vmatprep.mubr.msk.f32.mxu0 %vm124_vm2, %v1639_v51 }
 0x6df   :  { %v989_v55 = vpop.permute.xlu1 %988 }
 0x6e0   :  { %v991_v58 = vrot.slane %v989_v55, 1  ;;  %v994_v60 = vadd.f32 %v989_v55, %v981_v53 }
 0x6e2   :  { %v995_v59 = vadd.f32 %v991_v58, %v982_v52  ;;  %v1640_v52 = vld [vmem:[%s2176_s0 + $0x18] sm:$0xff] }
 0x6e3   :  { %1624 = vmatmul.mubr.msk.f32.gmra.mxu0 %vm124_vm2, %v1640_v52 }
 0x6e4   :  { %v998_v39 = vrot.slane %v995_v59, 7 }
 0x6e6   :  { %v999_v14 = vsel %vm465_vm7, %v998_v39, %v994_v60 }
 0x6e7   :  { %1001 = vrot.lane.b32.xlu0 %v999_v14, %s1643_s25 }
 0x759   :  { %v1002_v42 = vpop.permute.xlu0 %1001 }
 0x75a   :  { %v1004_v61 = vrot.slane %v1002_v42, 1  ;;  %v1007_v63 = vadd.f32 %v1002_v42, %v994_v60 }
 0x75c   :  { %v1008_v62 = vadd.f32 %v1004_v61, %v995_v59 }
 0x75e   :  { %v1011_v0 = vrot.slane %v1008_v62, 7 }
 0x760   :  { %v1012_v6 = vsel %vm465_vm7, %v1011_v0, %v1007_v63 }
 0x761   :  { %1014 = vrot.lane.b32.xlu1 %v1012_v6, %s1644_s26 }
 0x7d3   :  { %v1015_v7 = vpop.permute.xlu1 %1014 }
 0x7d4   :  { %v1017_v8 = vrot.slane %v1015_v7, 1  ;;  %v1020_v9 = vadd.f32 %v1015_v7, %v1007_v63 }
 0x7d6   :  { %v1021_v11 = vadd.f32 %v1017_v8, %v1008_v62  ;;  %v1022_v12 = vmul.f32 0.00390625, %v1020_v9 }
 0x7d8   :  { %v1023_v10 = vmul.f32 0.00390625, %v1021_v11  ;;  %v1027_v13 = vrot.slane %v1022_v12, %v1848_v57 }
 0x7da   :  { %v1031_v15 = vrot.slane %v1023_v10, %v1848_v57  ;;  %v2094_v16 = vsub.f32 %v953_v30, %v1027_v13  ;;  %v2096_v17 = vsub.f32 %v954_v29, %v1027_v13  ;;  %v1622_v10 = vpop.f32.mrf.mxu0 }
 0x7dc   :  { %v2098_v18 = vsub.f32 %v955_v38, %v1031_v15  ;;  %v2100_v19 = vsub.f32 %v956_v37, %v1031_v15  ;;  %v1036_v20 = vmul.f32 %v2094_v16, %v2094_v16  ;;  %v1037_v56 = vmul.f32 %v2096_v17, %v2096_v17  ;;  %v1212_v13 = vpop.f32.mrf.mxu0 }
 0x7de   :  { %v1038_v21 = vmul.f32 %v2098_v18, %v2098_v18  ;;  %v1039_v22 = vmul.f32 %v2100_v19, %v2100_v19  ;;  %v1040_v23 = vadd.f32 %v1037_v56, %v1036_v20  ;;  %v1625_v56 = vpop.f32.mrf.mxu0 }
 0x7e0   :  { %v1041_v24 = vrot.slane %v1040_v23, 4  ;;  %v1047_v25 = vadd.f32 %v1039_v22, %v1038_v21 }
 0x7e2   :  { %v1042_v26 = vadd.f32 %v1041_v24, %v1040_v23  ;;  %v1048_v27 = vrot.slane %v1047_v25, 4  ;;  %v1311_v23 = vld [vmem:[%s2179_s4] ss:$0 sm:$0xff] }
 0x7e4   :  { %v1043_v29 = vrot.slane %v1042_v26, 2  ;;  %v1049_v30 = vadd.f32 %v1048_v27, %v1047_v25 }
 0x7e6   :  { %v1044_v31 = vadd.f32 %v1043_v29, %v1042_v26  ;;  %v1050_v32 = vrot.slane %v1049_v30, 2 }
 0x7e8   :  { %v1045_v33 = vrot.slane %v1044_v31, 1  ;;  %v1051_v34 = vadd.f32 %v1050_v32, %v1049_v30  ;;  %v1218_v32 = vadd.f32 %v1622_v10, %v1311_v23 }
 0x7ea   :  { %v1052_v5 = vrot.slane %v1051_v34, 1  ;;  %v1046_v35 = vadd.f32 %v1045_v33, %v1044_v31  ;;  %v1222_v31 = vpop.f32.mrf.mxu0  ;;  %v1213_v33 = vadd.f32 %v1311_v23, %v1212_v13 }
 0x7ec   :  { %v1053_v36 = vadd.f32 %v1052_v5, %v1051_v34 }
 0x7ee   :  { %v1056_v37 = vsel %vm465_vm7, %v1053_v36, %v1046_v35 }
 0x7ef   :  { %1058 = vrot.lane.b32.xlu0 %v1056_v37, %s1641_s1  ;;  %v1223_v37 = vadd.f32 %v1311_v23, %v1222_v31 }
 0x861   :  { %v1059_v38 = vpop.permute.xlu0 %1058 }
 0x862   :  { %v1061_v40 = vrot.slane %v1059_v38, 1  ;;  %v1064_v45 = vadd.f32 %v1059_v38, %v1046_v35 }
 0x864   :  { %v1065_v41 = vadd.f32 %v1061_v40, %v1053_v36  ;;  %v1228_v36 = vadd.f32 %v1625_v56, %v1311_v23 }
 0x866   :  { %v1068_v46 = vrot.slane %v1065_v41, 7 }
 0x868   :  { %v1069_v48 = vsel %vm465_vm7, %v1068_v46, %v1064_v45 }
 0x869   :  { %1071 = vrot.lane.b32.xlu1 %v1069_v48, %s1642_s24 }
 0x8db   :  { %v1072_v53 = vpop.permute.xlu1 %1071 }
 0x8dc   :  { %v1074_v28 = vrot.slane %v1072_v53, 1  ;;  %v1077_v55 = vadd.f32 %v1072_v53, %v1064_v45 }
 0x8de   :  { %v1078_v54 = vadd.f32 %v1074_v28, %v1065_v41 }
 0x8e0   :  { %v1081_v58 = vrot.slane %v1078_v54, 7 }
 0x8e2   :  { %v1082_v59 = vsel %vm465_vm7, %v1081_v58, %v1077_v55 }
 0x8e3   :  { %1084 = vrot.lane.b32.xlu0 %v1082_v59, %s1643_s25 }
 0x955   :  { %v1085_v60 = vpop.permute.xlu0 %1084 }
 0x956   :  { %v1087_v39 = vrot.slane %v1085_v60, 1  ;;  %v1090_v42 = vadd.f32 %v1085_v60, %v1077_v55 }
 0x958   :  { %v1091_v14 = vadd.f32 %v1087_v39, %v1078_v54 }
 0x95a   :  { %v1094_v61 = vrot.slane %v1091_v14, 7 }
 0x95c   :  { %v1095_v62 = vsel %vm465_vm7, %v1094_v61, %v1090_v42 }
 0x95d   :  { %1097 = vrot.lane.b32.xlu1 %v1095_v62, %s1644_s26 }
 0x9cf   :  { %v1098_v63 = vpop.permute.xlu1 %1097 }
 0x9d0   :  { %v1100_v0 = vrot.slane %v1098_v63, 1  ;;  %v1103_v6 = vadd.f32 %v1098_v63, %v1090_v42 }
 0x9d2   :  { %v1104_v7 = vadd.f32 %v1100_v0, %v1091_v14  ;;  %v1105_v8 = vmul.f32 0.00390625, %v1103_v6 }
 0x9d4   :  { %v1106_v9 = vmul.f32 0.00390625, %v1104_v7  ;;  %v1107_v11 = vadd.f32 1e-05, %v1105_v8 }
 0x9d6   :  { %v1108_v12 = vadd.f32 1e-05, %v1106_v9  ;;  %1634 = vrsqrt.f32 %v1107_v11 }
 0x9d8   :  { %1636 = vrsqrt.f32 %v1108_v12 }
 0x9e3   :  { %v1635_v15 = vpop.eup %1634 }
 0x9e4   :  { %v1114_v20 = vrot.slane %v1635_v15, %v1848_v57 }
 0x9e5   :  { %v1637_v21 = vpop.eup %1636 }
 0x9e6   :  { %v1120_v22 = vmul.f32 %v1114_v20, %v2096_v17  ;;  %v1119_v24 = vmul.f32 %v1114_v20, %v2094_v16  ;;  %v1118_v25 = vrot.slane %v1637_v21, %v1848_v57 }
 0x9e8   :  { %v1124_v26 = vmul.f32 0.2, %v1120_v22  ;;  %v1123_v27 = vmul.f32 0.2, %v1119_v24  ;;  %v1122_v29 = vmul.f32 %v1118_v25, %v2100_v19  ;;  %v1121_v30 = vmul.f32 %v1118_v25, %v2098_v18 }
 0x9ea   :  { %v1128_v34 = vmax.f32 %v1120_v22, %v1124_v26  ;;  %v1127_v5 = vmax.f32 %v1119_v24, %v1123_v27  ;;  %v1126_v17 = vmul.f32 0.2, %v1122_v29  ;;  %v1125_v35 = vmul.f32 0.2, %v1121_v30 }
 0x9ec   :  { %v1232_v38 = vadd.f32 %v1218_v32, %v1128_v34  ;;  %v1231_v40 = vadd.f32 %v1213_v33, %v1127_v5  ;;  %v1130_v16 = vmax.f32 %v1122_v29, %v1126_v17  ;;  %v1129_v41 = vmax.f32 %v1121_v30, %v1125_v35 }
 0x9ee   :  { %1236 = vst [vmem:[%s2180_s5 + $0x8] sm:$0xff] %v1232_v38  ;;  %1235 = vst [vmem:[%s2180_s5] sm:$0xff] %v1231_v40  ;;  %v1234_v57 = vadd.f32 %v1228_v36, %v1130_v16  ;;  %v1233_v18 = vadd.f32 %v1223_v37, %v1129_v41 }
 0x9f0   :  { %1238 = vst [vmem:[%s2180_s5 + $0x18] sm:$0xff] %v1234_v57  ;;  %1237 = vst [vmem:[%s2180_s5 + $0x10] sm:$0xff] %v1233_v18 }

</bundles_post_ra>
